<compile_context>
chip_gen: v5e
topology: v5e:2x2
jax: 0.10.0
libtpu: 0.0.40
codegen_flags: <defaults>
</compile_context>

<pallas_src>
import numpy as np
import jax
import jax.numpy as jnp
from jax.experimental import pallas as pl
from jax.experimental.pallas import tpu as pltpu


LANE = 128  # TPU lane width; output last dim is padded to this for lane-dense stores.


def get_gaussian_kernel_1d(kernel_len: int, nsig: float) -> np.ndarray:
    """Replica of cv2.getGaussianKernel(k, nsig) (sigma > 0 path), normalized to sum 1."""
    ax = np.arange(kernel_len, dtype=np.float64) - (kernel_len - 1) / 2.0
    g = np.exp(-(ax ** 2) / (2.0 * float(nsig) ** 2))
    return g / g.sum()


def build_band_clamped(out_len: int, in_len: int, g: np.ndarray, pad: int) -> np.ndarray:
    """Banded 1D-blur operator with ReplicationPad folded in via index clamping.

    M[i, clamp(i + k - pad, 0, in_len-1)] += g[k]   =>   blur(pad_edge(x)) == M @ x
    """
    K = g.shape[0]
    M = np.zeros((out_len, in_len), dtype=np.float64)
    for i in range(out_len):
        for k in range(K):
            src = min(max(i + k - pad, 0), in_len - 1)
            M[i, src] += g[k]
    return M


def make_gaussian_conv(kernel_len: int, nsig: float, n: int, c: int, h: int, w: int):
    K = kernel_len
    pad = K // 2
    Ho = h + 2 * pad - K + 1          # = h + 1 for even K (matches PyTorch module)
    Wo = w + 2 * pad - K + 1          # = w + 1 for even K
    NC = n * c

    g = get_gaussian_kernel_1d(K, nsig)                       # (K,) sums to 1
    A = build_band_clamped(Ho, h, g, pad)                     # (Ho, H)  vertical blur+pad
    B = build_band_clamped(Wo, w, g, pad)                     # (Wo, W)  horizontal blur+pad

    # Block-diagonal vertical operator: one A block per (image, channel) plane.
    A_big_np = np.kron(np.eye(NC, dtype=np.float64), A).astype(np.float32)  # (NC*Ho, NC*H)
    # Lane-dense B^T: pad output width Wo -> LANE with zeros.
    Bt_np = np.zeros((w, LANE), dtype=np.float32)
    Bt_np[:, :Wo] = B.T.astype(np.float32)

    A_big = jnp.asarray(A_big_np)     # (NC*Ho, NC*H)
    Bt = jnp.asarray(Bt_np)           # (W, LANE)

    def conv_kernel(x_ref, a_ref, bt_ref, o_ref):
        # x_ref : (NC*H, W)        all planes stacked along sublanes
        # a_ref : (NC*Ho, NC*H)    block-diagonal vertical operator
        # bt_ref: (W, LANE)        horizontal operator, zero-padded to 128 lanes
        # o_ref : (NC*Ho, LANE)    lane-dense output
        y = jnp.dot(x_ref[...], bt_ref[...],
                    preferred_element_type=jnp.float32)        # (NC*H, LANE)  MXU
        o_ref[...] = jnp.dot(a_ref[...], y,
                             preferred_element_type=jnp.float32)  # (NC*Ho, LANE) MXU

    conv = pl.pallas_call(
        conv_kernel,
        out_shape=jax.ShapeDtypeStruct((NC * Ho, LANE), jnp.float32),
        grid_spec=pltpu.PrefetchScalarGridSpec(
            num_scalar_prefetch=0,
            grid=(1,),  # single step: everything fits comfortably in VMEM
            in_specs=[
                pl.BlockSpec((NC * h, w), lambda i: (0, 0)),
                pl.BlockSpec((NC * Ho, NC * h), lambda i: (0, 0)),
                pl.BlockSpec((w, LANE), lambda i: (0, 0)),
            ],
            out_specs=pl.BlockSpec((NC * Ho, LANE), lambda i: (0, 0)),
        ),
        compiler_params=pltpu.CompilerParams(
            dimension_semantics=("arbitrary",),
            # Problem is ~150 KiB total; no vmem_limit_bytes tuning needed at this size.
        ),
    )

    @jax.jit
    def forward(x):
        # x: (N, C, H, W) float32
        x2 = x.astype(jnp.float32).reshape(NC * h, w)          # free reshape (contiguous)
        out = conv(x2, A_big, Bt)                              # (NC*Ho, LANE)
        out = out.reshape(n, c, Ho, LANE)[..., :Wo]            # drop lane padding
        return out

    return forward, np.outer(g, g).astype(np.float32)


def reference_numpy(x_np: np.ndarray, kernel_len: int, nsig: float) -> np.ndarray:
    """Independent float64 reference: edge pad + dense K*K depthwise 'valid' conv."""
    K = kernel_len
    pad = K // 2
    g = get_gaussian_kernel_1d(K, nsig)
    w2d = np.outer(g, g)                                       # (K, K)
    x = x_np.astype(np.float64)
    xpad = np.pad(x, ((0, 0), (0, 0), (pad, pad), (pad, pad)), mode="edge")
    N, C, Hp, Wp = xpad.shape
    Ho, Wo = Hp - K + 1, Wp - K + 1
    out = np.zeros((N, C, Ho, Wo), dtype=np.float64)
    for ky in range(K):
        for kx in range(K):
            out += w2d[ky, kx] * xpad[:, :, ky:ky + Ho, kx:kx + Wo]
    return out.astype(np.float32)


if __name__ == "__main__":
    N, C, H, W = 2, 4, 16, 16
    KERNEL_LEN, NSIG = 16, 20

    key = jax.random.PRNGKey(0)
    x = jax.random.normal(key, (N, C, H, W), dtype=jnp.float32)

    fwd, weights2d = make_gaussian_conv(KERNEL_LEN, NSIG, N, C, H, W)
    out = jax.block_until_ready(fwd(x))

    assert out.shape == (N, C, H + 1, W + 1), out.shape

    ref = reference_numpy(np.asarray(x), KERNEL_LEN, NSIG)
    np.testing.assert_allclose(np.asarray(out), ref, atol=5e-4, rtol=5e-4)

    print("KERNEL_OK")
</pallas_src>

<mosaic_0001>
module attributes {stable_mosaic.version = 11 : i64} {
  func.func @conv_kernel(%arg0: i32, %arg1: memref<128x16xf32, #tpu.memory_space<vmem>>, %arg2: memref<136x128xf32, #tpu.memory_space<vmem>>, %arg3: memref<16x128xf32, #tpu.memory_space<vmem>>, %arg4: memref<136x128xf32, #tpu.memory_space<vmem>>) attributes {dimension_semantics = [#tpu.dimension_semantics<arbitrary>], iteration_bounds = array<i64: 1>, scalar_prefetch = 0 : i64, scratch_operands = 0 : i64, tpu.core_type = #tpu.core_type<tc>, window_params = [{pipeline_mode = #tpu.pipeline_mode<synchronous>, transform_indices = @transform_0, window_bounds = array<i64: 128, 16>}, {pipeline_mode = #tpu.pipeline_mode<synchronous>, transform_indices = @transform_1, window_bounds = array<i64: 136, 128>}, {pipeline_mode = #tpu.pipeline_mode<synchronous>, transform_indices = @transform_2, window_bounds = array<i64: 16, 128>}, {pipeline_mode = #tpu.pipeline_mode<synchronous>, transform_indices = @transform_3, window_bounds = array<i64: 136, 128>}]} {
    %c0 = arith.constant 0 : index
    %c0_0 = arith.constant 0 : index
    %0 = vector.load %arg1[%c0, %c0_0] : memref<128x16xf32, #tpu.memory_space<vmem>>, vector<128x16xf32>
    %c0_1 = arith.constant 0 : index
    %c0_2 = arith.constant 0 : index
    %1 = vector.load %arg3[%c0_1, %c0_2] : memref<16x128xf32, #tpu.memory_space<vmem>>, vector<16x128xf32>
    %cst = arith.constant dense<0.000000e+00> : vector<128x128xf32>
    %2 = tpu.matmul %0, %1, %cst {dimension_numbers = #tpu.dot_dimension_numbers<[1], [0], [0], [1], [0, 0, 1, 1], [], []>} : vector<128x16xf32>, vector<16x128xf32>, vector<128x128xf32> -> vector<128x128xf32>
    %c0_3 = arith.constant 0 : index
    %c0_4 = arith.constant 0 : index
    %3 = vector.load %arg2[%c0_3, %c0_4] : memref<136x128xf32, #tpu.memory_space<vmem>>, vector<136x128xf32>
    %cst_5 = arith.constant dense<0.000000e+00> : vector<136x128xf32>
    %4 = tpu.matmul %3, %2, %cst_5 {dimension_numbers = #tpu.dot_dimension_numbers<[1], [0], [0], [1], [0, 0, 1, 1], [], []>} : vector<136x128xf32>, vector<128x128xf32>, vector<136x128xf32> -> vector<136x128xf32>
    %c0_6 = arith.constant 0 : index
    %c0_7 = arith.constant 0 : index
    %5 = vector.load %arg4[%c0_6, %c0_7] : memref<136x128xf32, #tpu.memory_space<vmem>>, vector<136x128xf32>
    tpu.vector_store %arg4[%c0_6, %c0_7], %4 {strides = array<i32>} : memref<136x128xf32, #tpu.memory_space<vmem>>, vector<136x128xf32>,
    return
  }
  func.func @transform_0(%arg0: i32) -> (i32, i32) {
    %c0_i32 = arith.constant 0 : i32
    %c0_i32_0 = arith.constant 0 : i32
    %c0_i32_1 = arith.constant 0 : i32
    return %c0_i32, %c0_i32_0 : i32, i32
  }
  func.func @transform_1(%arg0: i32) -> (i32, i32) {
    %c0_i32 = arith.constant 0 : i32
    %c0_i32_0 = arith.constant 0 : i32
    %c0_i32_1 = arith.constant 0 : i32
    return %c0_i32, %c0_i32_0 : i32, i32
  }
  func.func @transform_2(%arg0: i32) -> (i32, i32) {
    %c0_i32 = arith.constant 0 : i32
    %c0_i32_0 = arith.constant 0 : i32
    %c0_i32_1 = arith.constant 0 : i32
    return %c0_i32, %c0_i32_0 : i32, i32
  }
  func.func @transform_3(%arg0: i32) -> (i32, i32) {
    %c0_i32 = arith.constant 0 : i32
    %c0_i32_0 = arith.constant 0 : i32
    %c0_i32_1 = arith.constant 0 : i32
    return %c0_i32, %c0_i32_0 : i32, i32
  }
}

</mosaic_0001>

<bundles_post_ra>
// kernel: forward.1
= control target key start
LH: loop header
LB: loop body
LE: loop exit
PB: predicated region body
PF: predicated region fallthrough
CT: control target
= control target key end

     0   :  { %8 = vsyncpa [#allocation3], 0  ;;  %s538_s0 = inlined_call_operand.hbm [shape: f32[128,16], index: 0, kind: input, shape index: {}]   ;;  %s539_s1 = inlined_call_operand.hbm [shape: f32[136,128], index: 1, kind: input, shape index: {}]   ;;  %s540_s2 = inlined_call_operand.hbm [shape: f32[16,128], index: 2, kind: input, shape index: {}]   ;;  %s541_s3 = inlined_call_operand.vmem [shape: f32[136,128], index: 3, kind: output, shape index: {}]  }
   0x1   :  { %9 = vsyncpa [#allocation5], 0  ;;  %s27_s14 = sshll.u32 %s539_s1, 4  ;;  %s432_s15 = smov [#allocation4]   ;;  %s28_s14 = int_to_ptr.hbm [resolvable:$true] %s27_s14 }
   0x2   :  { %s29_s16 = sshll.u32 %s432_s15, 4  ;;  %s14_s19 = sshll.u32 %s538_s0, 4  ;;  %s30_s16 = int_to_ptr.vmem [resolvable:$true] %s29_s16  ;;  %s15_s19 = int_to_ptr.hbm [resolvable:$true] %s14_s19 }
   0x3   :  { %s433_s20 = smov 128   ;;  %s434_s21 = smov 8  }
   0x4   :  { %35 = dma.hbm_to_vmem [thread:$0]  %s28_s14, 2176, %s30_s16, [#allocation5], %s433_s20, %s433_s20, %s434_s21  }
   0x5   :  { %s435_s22 = smov [#allocation2]   ;;  %s40_s26 = sshll.u32 %s540_s2, 4  ;;  %s41_s26 = int_to_ptr.hbm [resolvable:$true] %s40_s26 }
   0x6   :  { %s16_s23 = sshll.u32 %s435_s22, 4  ;;  %s436_s1 = smov [#allocation6]   ;;  %s17_s23 = int_to_ptr.vmem [resolvable:$true] %s16_s23 }
   0x7   :  { %22 = dma.hbm_to_vmem [thread:$0]  %s15_s19, 2048, %s17_s23, [#allocation3], %s433_s20, %s433_s20, %s434_s21  }
   0x8   :  { %s42_s27 = sshll.u32 %s436_s1, 4  ;;  %s43_s27 = int_to_ptr.vmem [resolvable:$true] %s42_s27 }
   0x9   :  { %48 = dma.hbm_to_vmem [thread:$0]  %s41_s26, 256, %s43_s27, [#allocation5], %s433_s20, %s433_s20, %s434_s21  }
   0xa   :  { %428 = dma.done.wait [#allocation3], 2048  }
   0xb   :  { %429 = vsyncadd [#allocation3], 4294965248 }
   0xc   :  { %430 = dma.done.wait [#allocation5], 2432  }
   0xd   :  { %431 = vsyncadd [#allocation5], 4294964864  ;;  %v78_v0 = vld [vmem:[#allocation6 + $0x8] sm:$0xff]  ;;  %v77_v1 = vld [vmem:[#allocation6] sm:$0xff]  ;;  %vm79_vm0 = vcmask 130048  }
   0xe   :  { %142 = vmatpush.msra.mxu0 %v78_v0  ;;  %317 = vmatpush.msra.mxu3 %v78_v0  ;;  %v61_v2 = vld [vmem:[#allocation2] sm:$0xff]  ;;  %v71_v3 = vld [vmem:[#allocation2 + $0x50] sm:$0xff]  ;;  %v62_v4 = vld [vmem:[#allocation2 + $0x8] sm:$0xff] }
   0xf   :  { %v72_v5 = vld [vmem:[#allocation2 + $0x58] sm:$0xff]  ;;  %v63_v6 = vld [vmem:[#allocation2 + $0x10] sm:$0xff]  ;;  %v73_v7 = vld [vmem:[#allocation2 + $0x60] sm:$0xff] }
  0x10   :  { %143 = vmatpush.msra.mxu0 %v77_v1  ;;  %318 = vmatpush.msra.mxu3 %v77_v1  ;;  %v64_v8 = vld [vmem:[#allocation2 + $0x18] sm:$0xff]  ;;  %v74_v9 = vld [vmem:[#allocation2 + $0x68] sm:$0xff]  ;;  %v65_v10 = vld [vmem:[#allocation2 + $0x20] sm:$0xff] }
  0x11   :  { %301 = vmatmul.msk.f32.vlgmr.msra.gmra.mxu0 %vm79_vm0, %v61_v2  ;;  %311 = vmatmul.msk.f32.vlgmr.msra.gmra.mxu3 %vm79_vm0, %v71_v3  ;;  %v75_v11 = vld [vmem:[#allocation2 + $0x70] sm:$0xff]  ;;  %v66_v12 = vld [vmem:[#allocation2 + $0x28] sm:$0xff]  ;;  %v76_v13 = vld [vmem:[#allocation2 + $0x78] sm:$0xff] }
  0x12   :  { %v67_v14 = vld [vmem:[#allocation2 + $0x30] sm:$0xff]  ;;  %v68_v15 = vld [vmem:[#allocation2 + $0x38] sm:$0xff]  ;;  %v69_v16 = vld [vmem:[#allocation2 + $0x40] sm:$0xff] }
  0x13   :  { %v70_v17 = vld [vmem:[#allocation2 + $0x48] sm:$0xff]  ;;  %v200_v34 = vld [vmem:[#allocation4 + $0x38] sm:$0xff]  ;;  %v193_v35 = vld [vmem:[#allocation4] sm:$0xff] }
  0x14   :  { %v207_v36 = vld [vmem:[#allocation4 + $0x70] sm:$0xff]  ;;  %v201_v37 = vld [vmem:[#allocation4 + $0x40] sm:$0xff]  ;;  %v194_v38 = vld [vmem:[#allocation4 + $0x8] sm:$0xff] }
  0x15   :  { %v208_v39 = vld [vmem:[#allocation4 + $0x78] sm:$0xff]  ;;  %v202_v40 = vld [vmem:[#allocation4 + $0x48] sm:$0xff]  ;;  %v195_v41 = vld [vmem:[#allocation4 + $0x10] sm:$0xff] }
  0x16   :  { %v209_v42 = vld [vmem:[#allocation4 + $0x80] sm:$0xff]  ;;  %v203_v43 = vld [vmem:[#allocation4 + $0x50] sm:$0xff]  ;;  %v196_v44 = vld [vmem:[#allocation4 + $0x18] sm:$0xff] }
  0x17   :  { %v204_v45 = vld [vmem:[#allocation4 + $0x58] sm:$0xff]  ;;  %v197_v46 = vld [vmem:[#allocation4 + $0x20] sm:$0xff]  ;;  %v198_v48 = vld [vmem:[#allocation4 + $0x28] sm:$0xff] }
  0x18   :  { %v205_v47 = vld [vmem:[#allocation4 + $0x60] sm:$0xff]  ;;  %v206_v49 = vld [vmem:[#allocation4 + $0x68] sm:$0xff]  ;;  %v199_v50 = vld [vmem:[#allocation4 + $0x30] sm:$0xff] }
  0x19   :  { %302 = vmatmul.msk.f32.gmra.mxu0 %vm79_vm0, %v62_v4  ;;  %312 = vmatmul.msk.f32.gmra.mxu3 %vm79_vm0, %v72_v5 }
  0x21   :  { %303 = vmatmul.msk.f32.gmra.mxu0 %vm79_vm0, %v63_v6  ;;  %313 = vmatmul.msk.f32.gmra.mxu3 %vm79_vm0, %v73_v7 }
  0x29   :  { %304 = vmatmul.msk.f32.gmra.mxu0 %vm79_vm0, %v64_v8  ;;  %314 = vmatmul.msk.f32.gmra.mxu3 %vm79_vm0, %v74_v9 }
  0x31   :  { %305 = vmatmul.msk.f32.gmra.mxu0 %vm79_vm0, %v65_v10  ;;  %315 = vmatmul.msk.f32.gmra.mxu3 %vm79_vm0, %v75_v11 }
  0x39   :  { %306 = vmatmul.msk.f32.gmra.mxu0 %vm79_vm0, %v66_v12  ;;  %316 = vmatmul.msk.f32.gmra.mxu3 %vm79_vm0, %v76_v13 }
  0x41   :  { %307 = vmatmul.msk.f32.gmra.mxu0 %vm79_vm0, %v67_v14 }
  0x49   :  { %308 = vmatmul.msk.f32.gmra.mxu0 %vm79_vm0, %v68_v15 }
  0x51   :  { %309 = vmatmul.msk.f32.gmra.mxu0 %vm79_vm0, %v69_v16 }
  0x59   :  { %310 = vmatmul.msk.f32.gmra.mxu0 %vm79_vm0, %v70_v17 }
  0x8e   :  { %v482_v18 = vpop.f32.mrf.mxu0 }
  0x94   :  { %v175_v19 = vpop.f32.mrf.mxu3 }
  0x96   :  { %v148_v20 = vpop.f32.mrf.mxu0 }
  0x9c   :  { %v178_v21 = vpop.f32.mrf.mxu3 }
  0x9e   :  { %v151_v22 = vpop.f32.mrf.mxu0 }
  0xa4   :  { %v181_v23 = vpop.f32.mrf.mxu3 }
  0xa6   :  { %v154_v24 = vpop.f32.mrf.mxu0 }
  0xac   :  { %v184_v25 = vpop.f32.mrf.mxu3 }
  0xae   :  { %v157_v26 = vpop.f32.mrf.mxu0 }
  0xb4   :  { %v187_v27 = vpop.f32.mrf.mxu3 }
  0xb6   :  { %v160_v28 = vpop.f32.mrf.mxu0 }
  0xbc   :  { %v190_v29 = vpop.f32.mrf.mxu3 }
  0xbd   :  { %210 = vmatpush.msra.mxu1 %v190_v29  ;;  %319 = vmatpush.msra.mxu2 %v190_v29 }
  0xbe   :  { %320 = vmatpush.msrb.mxu3 %v190_v29  ;;  %v163_v30 = vpop.f32.mrf.mxu0 }
  0xbf   :  { %211 = vmatpush.msra.mxu1 %v187_v27  ;;  %321 = vmatpush.msra.mxu2 %v187_v27 }
  0xc0   :  { %322 = vmatpush.msrb.mxu3 %v187_v27 }
  0xc1   :  { %212 = vmatpush.msra.mxu1 %v184_v25  ;;  %323 = vmatpush.msra.mxu2 %v184_v25 }
  0xc2   :  { %324 = vmatpush.msrb.mxu3 %v184_v25 }
  0xc3   :  { %213 = vmatpush.msra.mxu1 %v181_v23  ;;  %325 = vmatpush.msra.mxu2 %v181_v23 }
  0xc4   :  { %326 = vmatpush.msrb.mxu3 %v181_v23 }
  0xc5   :  { %214 = vmatpush.msra.mxu1 %v178_v21  ;;  %327 = vmatpush.msra.mxu2 %v178_v21 }
  0xc6   :  { %328 = vmatpush.msrb.mxu3 %v178_v21  ;;  %v166_v31 = vpop.f32.mrf.mxu0 }
  0xc7   :  { %215 = vmatpush.msra.mxu1 %v175_v19  ;;  %329 = vmatpush.msra.mxu2 %v175_v19 }
  0xc8   :  { %330 = vmatpush.msrb.mxu3 %v175_v19 }
  0xce   :  { %v169_v32 = vpop.f32.mrf.mxu0 }
  0xd6   :  { %v172_v33 = vpop.f32.mrf.mxu0 }
  0xd7   :  { %216 = vmatpush.msra.mxu1 %v172_v33  ;;  %331 = vmatpush.msra.mxu2 %v172_v33 }
  0xd8   :  { %332 = vmatpush.msrb.mxu3 %v172_v33 }
  0xd9   :  { %217 = vmatpush.msra.mxu1 %v169_v32  ;;  %333 = vmatpush.msra.mxu2 %v169_v32 }
  0xda   :  { %334 = vmatpush.msrb.mxu3 %v169_v32 }
  0xdb   :  { %218 = vmatpush.msra.mxu1 %v166_v31  ;;  %335 = vmatpush.msra.mxu2 %v166_v31 }
  0xdc   :  { %336 = vmatpush.msrb.mxu3 %v166_v31 }
  0xdd   :  { %219 = vmatpush.msra.mxu1 %v163_v30  ;;  %337 = vmatpush.msra.mxu2 %v163_v30 }
  0xde   :  { %338 = vmatpush.msrb.mxu3 %v163_v30 }
  0xdf   :  { %220 = vmatpush.msra.mxu1 %v160_v28  ;;  %339 = vmatpush.msra.mxu2 %v160_v28 }
  0xe0   :  { %340 = vmatpush.msrb.mxu3 %v160_v28 }
  0xe1   :  { %221 = vmatpush.msra.mxu1 %v157_v26  ;;  %341 = vmatpush.msra.mxu2 %v157_v26 }
  0xe2   :  { %342 = vmatpush.msrb.mxu3 %v157_v26 }
  0xe3   :  { %222 = vmatpush.msra.mxu1 %v154_v24  ;;  %343 = vmatpush.msra.mxu2 %v154_v24 }
  0xe4   :  { %344 = vmatpush.msrb.mxu3 %v154_v24 }
  0xe5   :  { %223 = vmatpush.msra.mxu1 %v151_v22  ;;  %345 = vmatpush.msra.mxu2 %v151_v22 }
  0xe6   :  { %346 = vmatpush.msrb.mxu3 %v151_v22 }
  0xe7   :  { %224 = vmatpush.msra.mxu1 %v148_v20  ;;  %347 = vmatpush.msra.mxu2 %v148_v20 }
  0xe8   :  { %348 = vmatpush.msrb.mxu3 %v148_v20 }
  0xe9   :  { %225 = vmatpush.msra.mxu1 %v482_v18  ;;  %349 = vmatpush.msra.mxu2 %v482_v18 }
  0xea   :  { %350 = vmatpush.msrb.mxu3 %v482_v18  ;;  %247 = vmatmul.f32.vlgmr.msra.gmra.mxu2 %v200_v34 }
  0xeb   :  { %226 = vmatmul.f32.vlgmr.msra.gmra.mxu1 %v193_v35  ;;  %268 = vmatmul.f32.vlgmr.msrb.gmra.mxu3 %v207_v36 }
  0xf2   :  { %250 = vmatmul.f32.gmra.mxu2 %v201_v37 }
  0xf3   :  { %229 = vmatmul.f32.gmra.mxu1 %v194_v38  ;;  %271 = vmatmul.f32.gmra.mxu3 %v208_v39 }
  0xfa   :  { %253 = vmatmul.f32.gmra.mxu2 %v202_v40 }
  0xfb   :  { %232 = vmatmul.f32.gmra.mxu1 %v195_v41  ;;  %274 = vmatmul.f32.gmra.mxu3 %v209_v42 }
 0x102   :  { %256 = vmatmul.f32.gmra.mxu2 %v203_v43 }
 0x103   :  { %235 = vmatmul.f32.gmra.mxu1 %v196_v44 }
 0x10a   :  { %259 = vmatmul.f32.gmra.mxu2 %v204_v45 }
 0x10b   :  { %238 = vmatmul.f32.gmra.mxu1 %v197_v46 }
 0x112   :  { %262 = vmatmul.f32.gmra.mxu2 %v205_v47 }
 0x113   :  { %241 = vmatmul.f32.gmra.mxu1 %v198_v48 }
 0x11a   :  { %265 = vmatmul.f32.gmra.mxu2 %v206_v49 }
 0x11b   :  { %244 = vmatmul.f32.gmra.mxu1 %v199_v50 }
 0x168   :  { %v227_v51 = vpop.f32.mrf.mxu1 }
 0x169   :  { %278 = vst [vmem:[%s541_s3] sm:$0xff] %v227_v51 }
 0x16d   :  { %v248_v52 = vpop.f32.mrf.mxu2 }
 0x16e   :  { %285 = vst [vmem:[%s541_s3 + $0x38] sm:$0xff] %v248_v52  ;;  %v269_v53 = vpop.f32.mrf.mxu3 }
 0x16f   :  { %292 = vst [vmem:[%s541_s3 + $0x70] sm:$0xff] %v269_v53 }
 0x170   :  { %v230_v54 = vpop.f32.mrf.mxu1 }
 0x171   :  { %279 = vst [vmem:[%s541_s3 + $0x8] sm:$0xff] %v230_v54 }
 0x175   :  { %v251_v55 = vpop.f32.mrf.mxu2 }
 0x176   :  { %286 = vst [vmem:[%s541_s3 + $0x40] sm:$0xff] %v251_v55  ;;  %v272_v56 = vpop.f32.mrf.mxu3 }
 0x177   :  { %293 = vst [vmem:[%s541_s3 + $0x78] sm:$0xff] %v272_v56 }
 0x178   :  { %v233_v57 = vpop.f32.mrf.mxu1 }
 0x179   :  { %280 = vst [vmem:[%s541_s3 + $0x10] sm:$0xff] %v233_v57 }
 0x17d   :  { %v254_v58 = vpop.f32.mrf.mxu2 }
 0x17e   :  { %287 = vst [vmem:[%s541_s3 + $0x48] sm:$0xff] %v254_v58  ;;  %v275_v59 = vpop.f32.mrf.mxu3 }
 0x17f   :  { %294 = vst [vmem:[%s541_s3 + $0x80] sm:$0xff] %v275_v59 }
 0x180   :  { %v236_v60 = vpop.f32.mrf.mxu1 }
 0x181   :  { %281 = vst [vmem:[%s541_s3 + $0x18] sm:$0xff] %v236_v60 }
 0x185   :  { %v257_v61 = vpop.f32.mrf.mxu2 }
 0x186   :  { %288 = vst [vmem:[%s541_s3 + $0x50] sm:$0xff] %v257_v61 }
 0x188   :  { %v239_v62 = vpop.f32.mrf.mxu1 }
 0x189   :  { %282 = vst [vmem:[%s541_s3 + $0x20] sm:$0xff] %v239_v62 }
 0x18d   :  { %v260_v63 = vpop.f32.mrf.mxu2 }
 0x18e   :  { %289 = vst [vmem:[%s541_s3 + $0x58] sm:$0xff] %v260_v63 }
 0x190   :  { %v242_v0 = vpop.f32.mrf.mxu1 }
 0x191   :  { %283 = vst [vmem:[%s541_s3 + $0x28] sm:$0xff] %v242_v0 }
 0x195   :  { %v263_v1 = vpop.f32.mrf.mxu2 }
 0x196   :  { %290 = vst [vmem:[%s541_s3 + $0x60] sm:$0xff] %v263_v1 }
 0x198   :  { %v245_v2 = vpop.f32.mrf.mxu1 }
 0x199   :  { %284 = vst [vmem:[%s541_s3 + $0x30] sm:$0xff] %v245_v2 }
 0x19d   :  { %v266_v3 = vpop.f32.mrf.mxu2 }
 0x19e   :  { %291 = vst [vmem:[%s541_s3 + $0x68] sm:$0xff] %v266_v3 }
 0x19f   :  { %299 = vsyncpa [#allocation3], 1 }
 0x1a0   :  { %300 = vsyncpa [#allocation5], 1 }

</bundles_post_ra>
